<compile_context>
chip_gen: v6e
topology: v6e:2x2x1
jax: 0.10.0
libtpu: 0.0.40
codegen_flags: <defaults>
</compile_context>

<pallas_src>
import jax
import jax.numpy as jnp
from jax.experimental import pallas as pl
from jax.experimental.pallas import tpu as pltpu  # noqa: F401  (TPU backend)

LANE = 128


def _round_up(n, m=LANE):
    return ((n + m - 1) // m) * m


# ----------------------------- fused Pallas kernel ------------------------------

def _mmdgm_fused_kernel(xe_ref, w3_ref, wms_ref, bias_ref, out_ref):
    """Full MMDGM forward: encoders -> rsample -> concat -> decoders.

    Shapes (S = 128, M = num modalities, B = batch):
      xe_ref   (2, M, B, S)  f32   [0]=zero-padded x_m, [1]=eps_m (real cols at m*L)
      w3_ref   (3, M, S, S)  bf16  [0]=enc W1, [1]=dec V1 (compact-latent rows), [2]=dec V2
      wms_ref  (M, S, 2S)    bf16  fused [Wmu | Wsig], real cols at m*L inside each half
      bias_ref (M, 8, 2S)    f32   rows: 0=b1, 1=[bmu|bsig], 2=c1, 3=c2
      out_ref  (B, M*S)      f32   decoder m output at lane-aligned cols [m*S, (m+1)*S)
    """
    M = wms_ref.shape[0]
    S = w3_ref.shape[-1]
    B = out_ref.shape[0]

    # ---- encoders + Normal(mu, scale).rsample(); concatenation aggregation ----
    # Each z_m is exactly zero outside lanes [m*L, (m+1)*L)  (mu pad = 0 by weight
    # packing; softplus(0)*eps_pad = 0 since eps pad = 0), so summing the z_m is
    # exactly the concatenation into one compact 128-lane latent block.
    zs = jnp.zeros((B, S), jnp.float32)
    for m in range(M):                                          # static unroll
        x = xe_ref[0, m].astype(jnp.bfloat16)                   # (B, S)
        eps = xe_ref[1, m]                                      # (B, S) f32
        h = jnp.dot(x, w3_ref[0, m], preferred_element_type=jnp.float32)
        h = jnp.maximum(h + bias_ref[m, 0:1, :S], 0.0)          # ReLU (f32)
        musig = (jnp.dot(h.astype(jnp.bfloat16), wms_ref[m],
                         preferred_element_type=jnp.float32)
                 + bias_ref[m, 1:2, :])                         # (B, 2S) = [mu | raw]
        mu = musig[:, :S]                                       # lane-aligned slice
        scale = jax.nn.softplus(musig[:, S:])                   # positive scale
        zs = zs + mu + scale * eps                              # z_m -> its lane window

    zs_bf = zs.astype(jnp.bfloat16)                             # aggregated latent

    # ---- decoders (each consumes the full aggregated latent, K = 128) ----
    for m in range(M):
        hd = jnp.dot(zs_bf, w3_ref[1, m], preferred_element_type=jnp.float32)
        hd = jnp.maximum(hd + bias_ref[m, 2:3, :S], 0.0)        # ReLU (f32)
        out_ref[:, m * S:(m + 1) * S] = (
            jnp.dot(hd.astype(jnp.bfloat16), w3_ref[2, m],
                    preferred_element_type=jnp.float32)
            + bias_ref[m, 3:4, :S])


def _full_spec(shape):
    # gridless: whole (lane-dense) array lives in VMEM as one block
    return pl.BlockSpec(shape, lambda: (0,) * len(shape))


def _make_forward(modality_dims, latent_dim, M, S):
    @jax.jit
    def forward(xs, eps, w3, wms, bias):
        B = xs[0].shape[0]
        # Pack / zero-pad inputs on device, inside this single jitted dispatch
        # (no eager host-side padding).  eps_m lands at lanes [m*L, (m+1)*L).
        xe = jnp.zeros((2, M, B, S), jnp.float32)
        for m, d in enumerate(modality_dims):
            xe = xe.at[0, m, :, :d].set(xs[m])
            xe = xe.at[1, m, :, m * latent_dim:(m + 1) * latent_dim].set(eps[m])

        args = (xe, w3, wms, bias)
        cost = pl.CostEstimate(
            flops=int(M * 2 * B * S * S * 5),               # W1 + (Wmu|Wsig) + V1 + V2
            transcendentals=int(2 * M * B * S),             # softplus ~ exp + log
            bytes_accessed=int(sum(a.size * a.dtype.itemsize for a in args)
                               + B * M * S * 4),
        )
        return pl.pallas_call(
            _mmdgm_fused_kernel,
            out_shape=jax.ShapeDtypeStruct((B, M * S), jnp.float32),
            in_specs=[_full_spec(a.shape) for a in args],
            out_specs=_full_spec((B, M * S)),
            cost_estimate=cost,
        )(*args)

    return forward


# ----------------------------- MMDGM wrapper -------------------------------

class MMDGMPallas:
    """Concatenation-aggregation MMDGM with Gaussian posteriors (fused kernel)."""

    def __init__(self, modality_dims, latent_dim, hidden_dim, key):
        self.modality_dims = list(modality_dims)
        self.latent_dim = latent_dim
        self.hidden_dim = hidden_dim
        M = self.num_modalities = len(modality_dims)
        self.decoder_latent_dim = latent_dim * M            # concatenation

        DP = _round_up(max(modality_dims))
        HP = _round_up(hidden_dim)
        # Slab packing below assumes all padded feature dims collapse to one
        # 128-lane square and the full concatenated latent fits one lane block.
        assert DP == LANE and HP == LANE, "toy config must pad to 128 everywhere"
        assert M * latent_dim <= LANE, "compact latent must fit one 128-lane block"
        S = self.S = LANE

        def init(k, shape, scale=0.1):
            return scale * jax.random.normal(k, shape, dtype=jnp.float32)

        # ---- unpadded parameters (used by the pure-JAX reference) ----
        self.enc_params, self.dec_params = [], []
        keys = jax.random.split(key, 2 * M)
        for m, d in enumerate(modality_dims):
            ek = jax.random.split(keys[m], 6)
            self.enc_params.append(dict(
                w1=init(ek[0], (d, hidden_dim)),
                b1=init(ek[1], (1, hidden_dim)),
                wmu=init(ek[2], (hidden_dim, latent_dim)),
                bmu=init(ek[3], (1, latent_dim)),
                wsig=init(ek[4], (hidden_dim, latent_dim)),
                bsig=init(ek[5], (1, latent_dim)),
            ))
            dk = jax.random.split(keys[M + m], 4)
            self.dec_params.append(dict(
                v1=init(dk[0], (self.decoder_latent_dim, hidden_dim)),
                c1=init(dk[1], (1, hidden_dim)),
                v2=init(dk[2], (hidden_dim, d)),
                c2=init(dk[3], (1, d)),
            ))

        # ---- packed slabs (exactly 3 weight/bias inputs to the kernel) ----
        H, L = hidden_dim, latent_dim
        w3 = jnp.zeros((3, M, S, S), jnp.float32)        # [W1, V1(compact), V2]
        wms = jnp.zeros((M, S, 2 * S), jnp.float32)      # fused [Wmu | Wsig]
        bias = jnp.zeros((M, 8, 2 * S), jnp.float32)     # merged bias slab
        for m, d in enumerate(modality_dims):
            ep, dp = self.enc_params[m], self.dec_params[m]
            w3 = w3.at[0, m, :d, :H].set(ep["w1"])
            for j in range(M):  # compact latent: rows j*L..(j+1)*L of V1
                w3 = w3.at[1, m, j * L:(j + 1) * L, :H].set(
                    dp["v1"][j * L:(j + 1) * L, :])
            w3 = w3.at[2, m, :H, :d].set(dp["v2"])
            # mu / sigma columns pre-shifted to this modality's lane window m*L
            wms = wms.at[m, :H, m * L:(m + 1) * L].set(ep["wmu"])
            wms = wms.at[m, :H, S + m * L:S + (m + 1) * L].set(ep["wsig"])
            bias = bias.at[m, 0, :H].set(ep["b1"][0])
            bias = bias.at[m, 1, m * L:(m + 1) * L].set(ep["bmu"][0])
            bias = bias.at[m, 1, S + m * L:S + (m + 1) * L].set(ep["bsig"][0])
            bias = bias.at[m, 2, :H].set(dp["c1"][0])
            bias = bias.at[m, 3, :d].set(dp["c2"][0])

        # bf16 matmul operands (MXU-native); biases & elementwise stay f32.
        self.packed = (w3.astype(jnp.bfloat16), wms.astype(jnp.bfloat16), bias)
        self._forward = _make_forward(tuple(self.modality_dims), latent_dim, M, S)

    def __call__(self, modalities, eps_list):
        out = self._forward(tuple(modalities), tuple(eps_list), *self.packed)
        S = self.S
        return [out[:, m * S:m * S + d]
                for m, d in enumerate(self.modality_dims)]


# ------------------------------ pure-JAX ref --------------------------------

def reference_forward(model, modalities, eps_list):
    zs_list = []
    for x, eps, p in zip(modalities, eps_list, model.enc_params):
        h = jax.nn.relu(x @ p["w1"] + p["b1"])
        mu = h @ p["wmu"] + p["bmu"]
        scale = jax.nn.softplus(h @ p["wsig"] + p["bsig"])
        zs_list.append(mu + scale * eps)
    zs = jnp.concatenate(zs_list, axis=1)
    outs = []
    for p in model.dec_params:
        h = jax.nn.relu(zs @ p["v1"] + p["c1"])
        outs.append(h @ p["v2"] + p["c2"])
    return outs


# ----------------------------------- main -----------------------------------

if __name__ == "__main__":
    key = jax.random.PRNGKey(0)
    k_model, k_x0, k_x1, k_e0, k_e1 = jax.random.split(key, 5)

    batch = 8
    latent_dim = 16
    hidden_dim = 32
    modality_dims = [64, 32]          # num_modalities = 2

    model = MMDGMPallas(modality_dims, latent_dim, hidden_dim, k_model)

    modalities = [
        jax.random.normal(k_x0, (batch, modality_dims[0]), dtype=jnp.float32),
        jax.random.normal(k_x1, (batch, modality_dims[1]), dtype=jnp.float32),
    ]
    # deterministic reparameterization noise (stands in for q.rsample() noise)
    eps_list = [
        jax.random.normal(k_e0, (batch, latent_dim), dtype=jnp.float32),
        jax.random.normal(k_e1, (batch, latent_dim), dtype=jnp.float32),
    ]

    outputs = model(modalities, eps_list)
    outputs = [jax.block_until_ready(o) for o in outputs]

    ref = reference_forward(model, modalities, eps_list)
    for o, r in zip(outputs, ref):
        assert o.shape == r.shape
        # bf16 matmul operands (f32 accumulation) => relaxed tolerance vs f32 ref
        assert jnp.allclose(o, r, atol=5e-2, rtol=5e-2), float(jnp.max(jnp.abs(o - r)))

    print("KERNEL_OK")
</pallas_src>

<mosaic_0001>
module attributes {stable_mosaic.version = 11 : i64} {
  func.func @_mmdgm_fused_kernel(%arg0: memref<2x2x8x128xf32, #tpu.memory_space<vmem>>, %arg1: memref<3x2x128x128xbf16, #tpu.memory_space<vmem>>, %arg2: memref<2x128x256xbf16, #tpu.memory_space<vmem>>, %arg3: memref<2x8x256xf32, #tpu.memory_space<vmem>>, %arg4: memref<8x256xf32, #tpu.memory_space<vmem>>) attributes {dimension_semantics = [], scalar_prefetch = 0 : i64, scratch_operands = 0 : i64, tpu.core_type = #tpu.core_type<tc>} {
    %cst = arith.constant 0.000000e+00 : f32
    %0 = vector.broadcast %cst : f32 to vector<8x128xf32>
    %c0 = arith.constant 0 : index
    %c0_0 = arith.constant 0 : index
    %c0_1 = arith.constant 0 : index
    %c0_2 = arith.constant 0 : index
    %1 = vector.load %arg0[%c0, %c0_0, %c0_1, %c0_2] : memref<2x2x8x128xf32, #tpu.memory_space<vmem>>, vector<1x1x8x128xf32>
    %2 = vector.shape_cast %1 : vector<1x1x8x128xf32> to vector<8x128xf32>
    %3 = arith.truncf %2 : vector<8x128xf32> to vector<8x128xbf16>
    %c1 = arith.constant 1 : index
    %c0_3 = arith.constant 0 : index
    %c0_4 = arith.constant 0 : index
    %c0_5 = arith.constant 0 : index
    %4 = vector.load %arg0[%c1, %c0_3, %c0_4, %c0_5] : memref<2x2x8x128xf32, #tpu.memory_space<vmem>>, vector<1x1x8x128xf32>
    %5 = vector.shape_cast %4 : vector<1x1x8x128xf32> to vector<8x128xf32>
    %c0_6 = arith.constant 0 : index
    %c0_7 = arith.constant 0 : index
    %c0_8 = arith.constant 0 : index
    %c0_9 = arith.constant 0 : index
    %6 = vector.load %arg1[%c0_6, %c0_7, %c0_8, %c0_9] : memref<3x2x128x128xbf16, #tpu.memory_space<vmem>>, vector<1x1x128x128xbf16>
    %7 = vector.shape_cast %6 : vector<1x1x128x128xbf16> to vector<128x128xbf16>
    %cst_10 = arith.constant dense<0.000000e+00> : vector<8x128xf32>
    %8 = tpu.matmul %3, %7, %cst_10 {dimension_numbers = #tpu.dot_dimension_numbers<[1], [0], [0], [1], [0, 0, 1, 1], [], []>} : vector<8x128xbf16>, vector<128x128xbf16>, vector<8x128xf32> -> vector<8x128xf32>
    %c0_11 = arith.constant 0 : index
    %c0_12 = arith.constant 0 : index
    %c0_13 = arith.constant 0 : index
    %9 = vector.load %arg3[%c0_11, %c0_12, %c0_13] : memref<2x8x256xf32, #tpu.memory_space<vmem>>, vector<1x1x128xf32>
    %10 = vector.shape_cast %9 : vector<1x1x128xf32> to vector<1x128xf32>
    %11 = vector.broadcast %10 : vector<1x128xf32> to vector<8x128xf32>
    %12 = arith.addf %8, %11 : vector<8x128xf32>
    %cst_14 = arith.constant 0.000000e+00 : f32
    %13 = vector.broadcast %cst_14 : f32 to vector<8x128xf32>
    %14 = arith.maximumf %12, %13 : vector<8x128xf32>
    %15 = arith.truncf %14 : vector<8x128xf32> to vector<8x128xbf16>
    %c0_15 = arith.constant 0 : index
    %c0_16 = arith.constant 0 : index
    %c0_17 = arith.constant 0 : index
    %16 = vector.load %arg2[%c0_15, %c0_16, %c0_17] : memref<2x128x256xbf16, #tpu.memory_space<vmem>>, vector<1x128x256xbf16>
    %17 = vector.shape_cast %16 : vector<1x128x256xbf16> to vector<128x256xbf16>
    %cst_18 = arith.constant dense<0.000000e+00> : vector<8x256xf32>
    %18 = tpu.matmul %15, %17, %cst_18 {dimension_numbers = #tpu.dot_dimension_numbers<[1], [0], [0], [1], [0, 0, 1, 1], [], []>} : vector<8x128xbf16>, vector<128x256xbf16>, vector<8x256xf32> -> vector<8x256xf32>
    %c0_19 = arith.constant 0 : index
    %c1_20 = arith.constant 1 : index
    %c0_21 = arith.constant 0 : index
    %19 = vector.load %arg3[%c0_19, %c1_20, %c0_21] : memref<2x8x256xf32, #tpu.memory_space<vmem>>, vector<1x1x256xf32>
    %20 = vector.shape_cast %19 : vector<1x1x256xf32> to vector<1x256xf32>
    %21 = vector.broadcast %20 : vector<1x256xf32> to vector<8x256xf32>
    %22 = arith.addf %18, %21 : vector<8x256xf32>
    %23 = vector.extract_strided_slice %22 {offsets = [0, 0], sizes = [8, 128], strides = [1, 1]} : vector<8x256xf32> to vector<8x128xf32>
    %24 = vector.extract_strided_slice %22 {offsets = [0, 128], sizes = [8, 128], strides = [1, 1]} : vector<8x256xf32> to vector<8x128xf32>
    %cst_22 = arith.constant 0.000000e+00 : f32
    %25 = vector.broadcast %cst_22 : f32 to vector<8x128xf32>
    %26 = arith.maximumf %24, %25 : vector<8x128xf32>
    %27 = vector.broadcast %cst_22 : f32 to vector<8x128xf32>
    %28 = arith.subf %24, %27 : vector<8x128xf32>
    %29 = arith.cmpf one, %28, %28 : vector<8x128xf32>
    %30 = vector.broadcast %cst_22 : f32 to vector<8x128xf32>
    %31 = arith.addf %24, %30 : vector<8x128xf32>
    %32 = math.absf %28 : vector<8x128xf32>
    %cst_23 = arith.constant 0.000000e+00 : f32
    %33 = vector.broadcast %cst_23 : f32 to vector<8x128xf32>
    %34 = arith.subf %33, %32 : vector<8x128xf32>
    %35 = math.exp %34 : vector<8x128xf32>
    %36 = math.log1p %35 : vector<8x128xf32>
    %37 = arith.addf %26, %36 : vector<8x128xf32>
    %38 = arith.select %29, %31, %37 : vector<8x128xi1>, vector<8x128xf32>
    %39 = arith.addf %0, %23 : vector<8x128xf32>
    %40 = arith.mulf %38, %5 : vector<8x128xf32>
    %41 = arith.addf %39, %40 : vector<8x128xf32>
    %c0_24 = arith.constant 0 : index
    %c1_25 = arith.constant 1 : index
    %c0_26 = arith.constant 0 : index
    %c0_27 = arith.constant 0 : index
    %42 = vector.load %arg0[%c0_24, %c1_25, %c0_26, %c0_27] : memref<2x2x8x128xf32, #tpu.memory_space<vmem>>, vector<1x1x8x128xf32>
    %43 = vector.shape_cast %42 : vector<1x1x8x128xf32> to vector<8x128xf32>
    %44 = arith.truncf %43 : vector<8x128xf32> to vector<8x128xbf16>
    %c1_28 = arith.constant 1 : index
    %c1_29 = arith.constant 1 : index
    %c0_30 = arith.constant 0 : index
    %c0_31 = arith.constant 0 : index
    %45 = vector.load %arg0[%c1_28, %c1_29, %c0_30, %c0_31] : memref<2x2x8x128xf32, #tpu.memory_space<vmem>>, vector<1x1x8x128xf32>
    %46 = vector.shape_cast %45 : vector<1x1x8x128xf32> to vector<8x128xf32>
    %c0_32 = arith.constant 0 : index
    %c1_33 = arith.constant 1 : index
    %c0_34 = arith.constant 0 : index
    %c0_35 = arith.constant 0 : index
    %47 = vector.load %arg1[%c0_32, %c1_33, %c0_34, %c0_35] : memref<3x2x128x128xbf16, #tpu.memory_space<vmem>>, vector<1x1x128x128xbf16>
    %48 = vector.shape_cast %47 : vector<1x1x128x128xbf16> to vector<128x128xbf16>
    %cst_36 = arith.constant dense<0.000000e+00> : vector<8x128xf32>
    %49 = tpu.matmul %44, %48, %cst_36 {dimension_numbers = #tpu.dot_dimension_numbers<[1], [0], [0], [1], [0, 0, 1, 1], [], []>} : vector<8x128xbf16>, vector<128x128xbf16>, vector<8x128xf32> -> vector<8x128xf32>
    %c1_37 = arith.constant 1 : index
    %c0_38 = arith.constant 0 : index
    %c0_39 = arith.constant 0 : index
    %50 = vector.load %arg3[%c1_37, %c0_38, %c0_39] : memref<2x8x256xf32, #tpu.memory_space<vmem>>, vector<1x1x128xf32>
    %51 = vector.shape_cast %50 : vector<1x1x128xf32> to vector<1x128xf32>
    %52 = vector.broadcast %51 : vector<1x128xf32> to vector<8x128xf32>
    %53 = arith.addf %49, %52 : vector<8x128xf32>
    %cst_40 = arith.constant 0.000000e+00 : f32
    %54 = vector.broadcast %cst_40 : f32 to vector<8x128xf32>
    %55 = arith.maximumf %53, %54 : vector<8x128xf32>
    %56 = arith.truncf %55 : vector<8x128xf32> to vector<8x128xbf16>
    %c1_41 = arith.constant 1 : index
    %c0_42 = arith.constant 0 : index
    %c0_43 = arith.constant 0 : index
    %57 = vector.load %arg2[%c1_41, %c0_42, %c0_43] : memref<2x128x256xbf16, #tpu.memory_space<vmem>>, vector<1x128x256xbf16>
    %58 = vector.shape_cast %57 : vector<1x128x256xbf16> to vector<128x256xbf16>
    %cst_44 = arith.constant dense<0.000000e+00> : vector<8x256xf32>
    %59 = tpu.matmul %56, %58, %cst_44 {dimension_numbers = #tpu.dot_dimension_numbers<[1], [0], [0], [1], [0, 0, 1, 1], [], []>} : vector<8x128xbf16>, vector<128x256xbf16>, vector<8x256xf32> -> vector<8x256xf32>
    %c1_45 = arith.constant 1 : index
    %c1_46 = arith.constant 1 : index
    %c0_47 = arith.constant 0 : index
    %60 = vector.load %arg3[%c1_45, %c1_46, %c0_47] : memref<2x8x256xf32, #tpu.memory_space<vmem>>, vector<1x1x256xf32>
    %61 = vector.shape_cast %60 : vector<1x1x256xf32> to vector<1x256xf32>
    %62 = vector.broadcast %61 : vector<1x256xf32> to vector<8x256xf32>
    %63 = arith.addf %59, %62 : vector<8x256xf32>
    %64 = vector.extract_strided_slice %63 {offsets = [0, 0], sizes = [8, 128], strides = [1, 1]} : vector<8x256xf32> to vector<8x128xf32>
    %65 = vector.extract_strided_slice %63 {offsets = [0, 128], sizes = [8, 128], strides = [1, 1]} : vector<8x256xf32> to vector<8x128xf32>
    %cst_48 = arith.constant 0.000000e+00 : f32
    %66 = vector.broadcast %cst_48 : f32 to vector<8x128xf32>
    %67 = arith.maximumf %65, %66 : vector<8x128xf32>
    %68 = vector.broadcast %cst_48 : f32 to vector<8x128xf32>
    %69 = arith.subf %65, %68 : vector<8x128xf32>
    %70 = arith.cmpf one, %69, %69 : vector<8x128xf32>
    %71 = vector.broadcast %cst_48 : f32 to vector<8x128xf32>
    %72 = arith.addf %65, %71 : vector<8x128xf32>
    %73 = math.absf %69 : vector<8x128xf32>
    %cst_49 = arith.constant 0.000000e+00 : f32
    %74 = vector.broadcast %cst_49 : f32 to vector<8x128xf32>
    %75 = arith.subf %74, %73 : vector<8x128xf32>
    %76 = math.exp %75 : vector<8x128xf32>
    %77 = math.log1p %76 : vector<8x128xf32>
    %78 = arith.addf %67, %77 : vector<8x128xf32>
    %79 = arith.select %70, %72, %78 : vector<8x128xi1>, vector<8x128xf32>
    %80 = arith.addf %41, %64 : vector<8x128xf32>
    %81 = arith.mulf %79, %46 : vector<8x128xf32>
    %82 = arith.addf %80, %81 : vector<8x128xf32>
    %83 = arith.truncf %82 : vector<8x128xf32> to vector<8x128xbf16>
    %c1_50 = arith.constant 1 : index
    %c0_51 = arith.constant 0 : index
    %c0_52 = arith.constant 0 : index
    %c0_53 = arith.constant 0 : index
    %84 = vector.load %arg1[%c1_50, %c0_51, %c0_52, %c0_53] : memref<3x2x128x128xbf16, #tpu.memory_space<vmem>>, vector<1x1x128x128xbf16>
    %85 = vector.shape_cast %84 : vector<1x1x128x128xbf16> to vector<128x128xbf16>
    %cst_54 = arith.constant dense<0.000000e+00> : vector<8x128xf32>
    %86 = tpu.matmul %83, %85, %cst_54 {dimension_numbers = #tpu.dot_dimension_numbers<[1], [0], [0], [1], [0, 0, 1, 1], [], []>} : vector<8x128xbf16>, vector<128x128xbf16>, vector<8x128xf32> -> vector<8x128xf32>
    %c0_55 = arith.constant 0 : index
    %c2 = arith.constant 2 : index
    %c0_56 = arith.constant 0 : index
    %87 = vector.load %arg3[%c0_55, %c2, %c0_56] : memref<2x8x256xf32, #tpu.memory_space<vmem>>, vector<1x1x128xf32>
    %88 = vector.shape_cast %87 : vector<1x1x128xf32> to vector<1x128xf32>
    %89 = vector.broadcast %88 : vector<1x128xf32> to vector<8x128xf32>
    %90 = arith.addf %86, %89 : vector<8x128xf32>
    %cst_57 = arith.constant 0.000000e+00 : f32
    %91 = vector.broadcast %cst_57 : f32 to vector<8x128xf32>
    %92 = arith.maximumf %90, %91 : vector<8x128xf32>
    %93 = arith.truncf %92 : vector<8x128xf32> to vector<8x128xbf16>
    %c2_58 = arith.constant 2 : index
    %c0_59 = arith.constant 0 : index
    %c0_60 = arith.constant 0 : index
    %c0_61 = arith.constant 0 : index
    %94 = vector.load %arg1[%c2_58, %c0_59, %c0_60, %c0_61] : memref<3x2x128x128xbf16, #tpu.memory_space<vmem>>, vector<1x1x128x128xbf16>
    %95 = vector.shape_cast %94 : vector<1x1x128x128xbf16> to vector<128x128xbf16>
    %cst_62 = arith.constant dense<0.000000e+00> : vector<8x128xf32>
    %96 = tpu.matmul %93, %95, %cst_62 {dimension_numbers = #tpu.dot_dimension_numbers<[1], [0], [0], [1], [0, 0, 1, 1], [], []>} : vector<8x128xbf16>, vector<128x128xbf16>, vector<8x128xf32> -> vector<8x128xf32>
    %c0_63 = arith.constant 0 : index
    %c3 = arith.constant 3 : index
    %c0_64 = arith.constant 0 : index
    %97 = vector.load %arg3[%c0_63, %c3, %c0_64] : memref<2x8x256xf32, #tpu.memory_space<vmem>>, vector<1x1x128xf32>
    %98 = vector.shape_cast %97 : vector<1x1x128xf32> to vector<1x128xf32>
    %99 = vector.broadcast %98 : vector<1x128xf32> to vector<8x128xf32>
    %100 = arith.addf %96, %99 : vector<8x128xf32>
    %c0_65 = arith.constant 0 : index
    %c0_66 = arith.constant 0 : index
    %101 = vector.load %arg4[%c0_65, %c0_66] : memref<8x256xf32, #tpu.memory_space<vmem>>, vector<8x128xf32>
    tpu.vector_store %arg4[%c0_65, %c0_66], %100 {strides = array<i32>} : memref<8x256xf32, #tpu.memory_space<vmem>>, vector<8x128xf32>,
    %c1_67 = arith.constant 1 : index
    %c1_68 = arith.constant 1 : index
    %c0_69 = arith.constant 0 : index
    %c0_70 = arith.constant 0 : index
    %102 = vector.load %arg1[%c1_67, %c1_68, %c0_69, %c0_70] : memref<3x2x128x128xbf16, #tpu.memory_space<vmem>>, vector<1x1x128x128xbf16>
    %103 = vector.shape_cast %102 : vector<1x1x128x128xbf16> to vector<128x128xbf16>
    %cst_71 = arith.constant dense<0.000000e+00> : vector<8x128xf32>
    %104 = tpu.matmul %83, %103, %cst_71 {dimension_numbers = #tpu.dot_dimension_numbers<[1], [0], [0], [1], [0, 0, 1, 1], [], []>} : vector<8x128xbf16>, vector<128x128xbf16>, vector<8x128xf32> -> vector<8x128xf32>
    %c1_72 = arith.constant 1 : index
    %c2_73 = arith.constant 2 : index
    %c0_74 = arith.constant 0 : index
    %105 = vector.load %arg3[%c1_72, %c2_73, %c0_74] : memref<2x8x256xf32, #tpu.memory_space<vmem>>, vector<1x1x128xf32>
    %106 = vector.shape_cast %105 : vector<1x1x128xf32> to vector<1x128xf32>
    %107 = vector.broadcast %106 : vector<1x128xf32> to vector<8x128xf32>
    %108 = arith.addf %104, %107 : vector<8x128xf32>
    %cst_75 = arith.constant 0.000000e+00 : f32
    %109 = vector.broadcast %cst_75 : f32 to vector<8x128xf32>
    %110 = arith.maximumf %108, %109 : vector<8x128xf32>
    %111 = arith.truncf %110 : vector<8x128xf32> to vector<8x128xbf16>
    %c2_76 = arith.constant 2 : index
    %c1_77 = arith.constant 1 : index
    %c0_78 = arith.constant 0 : index
    %c0_79 = arith.constant 0 : index
    %112 = vector.load %arg1[%c2_76, %c1_77, %c0_78, %c0_79] : memref<3x2x128x128xbf16, #tpu.memory_space<vmem>>, vector<1x1x128x128xbf16>
    %113 = vector.shape_cast %112 : vector<1x1x128x128xbf16> to vector<128x128xbf16>
    %cst_80 = arith.constant dense<0.000000e+00> : vector<8x128xf32>
    %114 = tpu.matmul %111, %113, %cst_80 {dimension_numbers = #tpu.dot_dimension_numbers<[1], [0], [0], [1], [0, 0, 1, 1], [], []>} : vector<8x128xbf16>, vector<128x128xbf16>, vector<8x128xf32> -> vector<8x128xf32>
    %c1_81 = arith.constant 1 : index
    %c3_82 = arith.constant 3 : index
    %c0_83 = arith.constant 0 : index
    %115 = vector.load %arg3[%c1_81, %c3_82, %c0_83] : memref<2x8x256xf32, #tpu.memory_space<vmem>>, vector<1x1x128xf32>
    %116 = vector.shape_cast %115 : vector<1x1x128xf32> to vector<1x128xf32>
    %117 = vector.broadcast %116 : vector<1x128xf32> to vector<8x128xf32>
    %118 = arith.addf %114, %117 : vector<8x128xf32>
    %c0_84 = arith.constant 0 : index
    %c128 = arith.constant 128 : index
    %119 = vector.load %arg4[%c0_84, %c128] : memref<8x256xf32, #tpu.memory_space<vmem>>, vector<8x128xf32>
    tpu.vector_store %arg4[%c0_84, %c128], %118 {strides = array<i32>} : memref<8x256xf32, #tpu.memory_space<vmem>>, vector<8x128xf32>,
    return
  }
}

</mosaic_0001>

<bundles_post_ra>
// kernel: forward.1
= control target key start
LH: loop header
LB: loop body
LE: loop exit
PB: predicated region body
PF: predicated region fallthrough
CT: control target
= control target key end

     0   :  { %9 = vsyncpa [#allocation3], 0  ;;  %s1649_s0 = inlined_call_operand.vmem [shape: f32[2,2,8,128], index: 0, kind: input, shape index: {}]   ;;  %s1650_s1 = inlined_call_operand.hbm [shape: bf16[3,2,128,128], index: 1, kind: input, shape index: {}]   ;;  %s1651_s2 = inlined_call_operand.hbm [shape: bf16[2,128,256], index: 2, kind: input, shape index: {}]   ;;  %s1652_s3 = inlined_call_operand.vmem [shape: f32[2,8,256], index: 3, kind: input, shape index: {}]   ;;  %s1653_s4 = inlined_call_operand.hbm [shape: f32[8,256], index: 4, kind: output, shape index: {}]  }
   0x1   :  { %10 = vsyncpa [#allocation6], 0 }
   0x2   :  { %11 = vsyncpa [#allocation4], 0  ;;  %s1505_s15 = smov [#allocation2]  }
   0x3   :  { %s19_s16 = sshll.u32 %s1505_s15, 4  ;;  %s20_s16 = int_to_ptr.vmem [resolvable:$true] %s19_s16 }
   0x4   :  { %s1447_s17 = scalar_lea.vmem %s20_s16, 6144  ;;  %p1452_p1 = scmp.lt.s32.totalorder %s20_s16, %s20_s16 }
   0x5   :  { %p1448_p0 = scmp.ne.s32.totalorder %s20_s16, %s1447_s17  ;;  %p1453_p2 = scmp.lt.s32.totalorder %s1447_s17, %s1447_s17 }
   0x7   :  { %p1454_p3 = por %p1453_p2, %p1452_p1 }
   0x9   :  { %p1455_p4 = pnand %p1454_p3, %p1448_p0 }
   0xb   :  { %1458 = shalt.err (!%p1455_p4)
}
   0xc   :  { %s1506_s18 = smov 64   ;;  %s1507_s19 = smov 4  }
   0xd   :  { %25 = dma.hbm_to_vmem [thread:$0]  %s1650_s1, 6144, %s20_s16, [#allocation3], %s1506_s18, %s1506_s18, %s1507_s19  }
   0xe   :  { %s1508_s22 = smov [#allocation5]  }
   0xf   :  { %s31_s23 = sshll.u32 %s1508_s22, 4  ;;  %s32_s23 = int_to_ptr.vmem [resolvable:$true] %s31_s23 }
  0x10   :  { %s1467_s24 = scalar_lea.vmem %s32_s23, 4096  ;;  %p1472_p6 = scmp.lt.s32.totalorder %s32_s23, %s32_s23 }
  0x11   :  { %p1468_p5 = scmp.ne.s32.totalorder %s32_s23, %s1467_s24  ;;  %p1473_p7 = scmp.lt.s32.totalorder %s1467_s24, %s1467_s24 }
  0x13   :  { %p1474_p8 = por %p1473_p7, %p1472_p6 }
  0x15   :  { %p1475_p9 = pnand %p1474_p8, %p1468_p5 }
  0x17   :  { %1478 = shalt.err (!%p1475_p9)
}
  0x18   :  { %s1509_s25 = smov 128   ;;  %s1510_s26 = smov 8  }
  0x19   :  { %37 = dma.hbm_to_vmem [thread:$0]  %s1651_s2, 4096, %s32_s23, [#allocation6], %s1509_s25, %s1509_s25, %s1510_s26  }
  0x1a   :  { %1499 = dma.done.wait [#allocation3], 6144  }
  0x1b   :  { %1500 = vsyncadd [#allocation3], 4294961152 }
  0x1c   :  { %1501 = dma.done.wait [#allocation6], 4096  }
  0x1d   :  { %1502 = vsyncadd [#allocation6], 4294963200  ;;  %v1511_v0 = vmov 0.0   ;;  %vm1512_vm0 = vmmov 0   ;;  %v1335_v1 = vld [vmem:[#allocation2 + $0x38] sm:$0xff]   ;;  %v1336_v2 = vld [vmem:[#allocation2 + $0x30] sm:$0xff]  }
  0x1e   :  { %1205 = vmatprep.subr.bf16.mxu0 %v1511_v0  ;;  %1221 = vmatprep.mubr.msk.bf16.mxu0 %vm1512_vm0, %v1511_v0  ;;  %v1337_v3 = vld [vmem:[#allocation2 + $0x28] sm:$0xff]   ;;  %v1338_v4 = vld [vmem:[#allocation2 + $0x20] sm:$0xff]   ;;  %v1339_v5 = vld [vmem:[#allocation2 + $0x18] sm:$0xff]   ;;  %v1513_v38 = vmov 0   ;;  %s1514_s24 = smov [#allocation7]  }
  0x1f   :  { %1206 = vmatpush3.bf16.msra.mxu0 %v1335_v1  ;;  %v1340_v6 = vld [vmem:[#allocation2 + $0x10] sm:$0xff]   ;;  %v1354_v9 = vld [vmem:[#allocation5 + $0x64] ss:$8 sps:$4 sm:$0xff]   ;;  %v1356_v10 = vld [vmem:[#allocation5 + $0x60] ss:$8 sps:$4 sm:$0xff]   ;;  %299 = vmatprep.mubr.bf16.mxu1 %v1513_v38  ;;  %s1052_s25 = sshll.u32 %s1514_s24, 4  ;;  %s1053_s25 = int_to_ptr.vmem [resolvable:$true] %s1052_s25 }
  0x20   :  { %1207 = vmatprep.subr.bf16.mxu0 %v1511_v0  ;;  %v1351_v7 = vld [vmem:[#allocation5 + $0x74] ss:$8 sps:$4 sm:$0xff]   ;;  %v1353_v8 = vld [vmem:[#allocation5 + $0x70] ss:$8 sps:$4 sm:$0xff]   ;;  %v1341_v12 = vld [vmem:[#allocation2 + $0x8] sm:$0xff]   ;;  %s1479_s26 = scalar_lea.vmem %s1053_s25, 256  ;;  %p1484_p11 = scmp.lt.s32.totalorder %s1053_s25, %s1053_s25 }
  0x21   :  { %267 = vmatprep.subr.bf16.mxu1 %v1351_v7  ;;  %v1357_v11 = vld [vmem:[#allocation5 + $0x54] ss:$8 sps:$4 sm:$0xff]   ;;  %v1342_v13 = vld [vmem:[#allocation2] sm:$0xff]   ;;  %v1359_v14 = vld [vmem:[#allocation5 + $0x50] ss:$8 sps:$4 sm:$0xff]   ;;  %p1480_p10 = scmp.ne.s32.totalorder %s1053_s25, %s1479_s26  ;;  %p1485_p12 = scmp.lt.s32.totalorder %s1479_s26, %s1479_s26 }
  0x22   :  { %268 = vmatpush1.bf16.msra.mxu1 %v1353_v8  ;;  %v47_v15 = vld [vmem:[%s1649_s0] sm:$0xff]  ;;  %v1363_v18 = vld [vmem:[#allocation5 + $0x34] ss:$8 sps:$4 sm:$0xff]   ;;  %v1365_v21 = vld [vmem:[#allocation5 + $0x30] ss:$8 sps:$4 sm:$0xff]  }
  0x23   :  { %1208 = vmatpush3.bf16.msra.mxu0 %v1336_v2  ;;  %269 = vmatprep.subr.bf16.mxu1 %v1354_v9  ;;  %v1360_v16 = vld [vmem:[#allocation5 + $0x44] ss:$8 sps:$4 sm:$0xff]   ;;  %v1362_v17 = vld [vmem:[#allocation5 + $0x40] ss:$8 sps:$4 sm:$0xff]   ;;  %v1343_v19 = vld [vmem:[#allocation2 + $0x78] sm:$0xff]   ;;  %v48_v20 = vpack.c.bf16 %v47_v15, %v47_v15  ;;  %v177_v15 = vlaneseq  ;;  %p1486_p13 = por %p1485_p12, %p1484_p11 }
  0x24   :  { %1209 = vmatprep.subr.bf16.mxu0 %v1511_v0  ;;  %v1366_v22 = vld [vmem:[#allocation5 + $0x24] ss:$8 sps:$4 sm:$0xff]   ;;  %v1344_v23 = vld [vmem:[#allocation2 + $0x70] sm:$0xff]   ;;  %v1368_v24 = vld [vmem:[#allocation5 + $0x20] ss:$8 sps:$4 sm:$0xff]  }
  0x25   :  { %v1369_v25 = vld [vmem:[#allocation5 + $0x14] ss:$8 sps:$4 sm:$0xff]   ;;  %v1345_v26 = vld [vmem:[#allocation2 + $0x68] sm:$0xff]   ;;  %v1346_v27 = vld [vmem:[#allocation2 + $0x60] sm:$0xff]   ;;  %p1487_p0 = pnand %p1486_p13, %p1480_p10 }
  0x26   :  { %270 = vmatpush1.bf16.msra.mxu1 %v1356_v10  ;;  %v1347_v28 = vld [vmem:[#allocation2 + $0x58] sm:$0xff]   ;;  %v1348_v29 = vld [vmem:[#allocation2 + $0x50] sm:$0xff]   ;;  %v1349_v30 = vld [vmem:[#allocation2 + $0x48] sm:$0xff]  }
  0x27   :  { %1210 = vmatpush3.bf16.msra.mxu0 %v1337_v3  ;;  %271 = vmatprep.subr.bf16.mxu1 %v1357_v11  ;;  %v1350_v31 = vld [vmem:[#allocation2 + $0x40] sm:$0xff]   ;;  %v1089_v32 = vld [vmem:[%s1649_s0 + $0x8] sm:$0xff]  ;;  %v1371_v34 = vld [vmem:[#allocation5 + $0x10] ss:$8 sps:$4 sm:$0xff]  }
  0x28   :  { %1211 = vmatprep.subr.bf16.mxu0 %v1511_v0  ;;  %v331_v33 = vpack.c.bf16 %v1089_v32, %v1089_v32  ;;  %v1372_v35 = vld [vmem:[#allocation5 + $0x4] ss:$8 sps:$4 sm:$0xff]   ;;  %v1374_v36 = vld [vmem:[#allocation5] ss:$8 sps:$4 sm:$0xff]   ;;  %v1377_v37 = vld [vmem:[#allocation5 + $0xf4] ss:$8 sps:$4 sm:$0xff]  }
  0x29   :  { %v67_v39 = vld [vmem:[%s1652_s3] ss:$0 sm:$0xff]  ;;  %v1375_v45 = vld [vmem:[#allocation5 + $0xf0] ss:$8 sps:$4 sm:$0xff]   ;;  %v1380_v47 = vld [vmem:[#allocation5 + $0xe4] ss:$8 sps:$4 sm:$0xff]  }
  0x2a   :  { %272 = vmatpush1.bf16.msra.mxu1 %v1359_v14  ;;  %v1378_v49 = vld [vmem:[#allocation5 + $0xe0] ss:$8 sps:$4 sm:$0xff]   ;;  %v1383_v50 = vld [vmem:[#allocation5 + $0xd4] ss:$8 sps:$4 sm:$0xff]   ;;  %v1381_v51 = vld [vmem:[#allocation5 + $0xd0] ss:$8 sps:$4 sm:$0xff]  }
  0x2b   :  { %1212 = vmatpush3.bf16.msra.mxu0 %v1338_v4  ;;  %273 = vmatprep.subr.bf16.mxu1 %v1360_v16  ;;  %v1386_v52 = vld [vmem:[#allocation5 + $0xc4] ss:$8 sps:$4 sm:$0xff]   ;;  %v1384_v53 = vld [vmem:[#allocation5 + $0xc0] ss:$8 sps:$4 sm:$0xff]   ;;  %v1389_v54 = vld [vmem:[#allocation5 + $0xb4] ss:$8 sps:$4 sm:$0xff]  }
  0x2c   :  { %1213 = vmatprep.subr.bf16.mxu0 %v1511_v0  ;;  %v1387_v55 = vld [vmem:[#allocation5 + $0xb0] ss:$8 sps:$4 sm:$0xff]   ;;  %v1392_v56 = vld [vmem:[#allocation5 + $0xa4] ss:$8 sps:$4 sm:$0xff]   ;;  %v1390_v57 = vld [vmem:[#allocation5 + $0xa0] ss:$8 sps:$4 sm:$0xff]  }
  0x2d   :  { %v1395_v58 = vld [vmem:[#allocation5 + $0x94] ss:$8 sps:$4 sm:$0xff]   ;;  %v1393_v59 = vld [vmem:[#allocation5 + $0x90] ss:$8 sps:$4 sm:$0xff]   ;;  %v1398_v60 = vld [vmem:[#allocation5 + $0x84] ss:$8 sps:$4 sm:$0xff]  }
  0x2e   :  { %274 = vmatpush1.bf16.msra.mxu1 %v1362_v17  ;;  %v1091_v61 = vld [vmem:[%s1652_s3 + $0x10] ss:$0 sm:$0xff]  ;;  %v1396_v63 = vld [vmem:[#allocation5 + $0x80] ss:$8 sps:$4 sm:$0xff]   ;;  %v1399_v7 = vld [vmem:[#allocation2 + $0xb8] sm:$0xff]  }
  0x2f   :  { %1214 = vmatpush3.bf16.msra.mxu0 %v1339_v5  ;;  %275 = vmatprep.subr.bf16.mxu1 %v1363_v18  ;;  %v1400_v8 = vld [vmem:[#allocation2 + $0xb0] sm:$0xff]   ;;  %v1401_v9 = vld [vmem:[#allocation2 + $0xa8] sm:$0xff]   ;;  %v1402_v10 = vld [vmem:[#allocation2 + $0xa0] sm:$0xff]   ;;  %v1593_v18 = vshrl.u32 %v177_v15, 7 }
  0x30   :  { %1215 = vmatprep.subr.bf16.mxu0 %v1511_v0  ;;  %v1403_v11 = vld [vmem:[#allocation2 + $0x98] sm:$0xff]   ;;  %v1406_v14 = vld [vmem:[#allocation2 + $0x80] sm:$0xff]   ;;  %v1416_v17 = vld [vmem:[#allocation2 + $0x130] sm:$0xff]  }
  0x31   :  { %v1415_v16 = vld [vmem:[#allocation2 + $0x138] sm:$0xff]   ;;  %v1421_v32 = vld [vmem:[#allocation2 + $0x108] sm:$0xff]  }
  0x32   :  { %276 = vmatpush1.bf16.msra.mxu1 %v1365_v21  ;;  %v1072_v21 = vld [vmem:[%s1652_s3 + $0x1] ss:$8 sm:$0x3] }
  0x33   :  { %1216 = vmatpush3.bf16.msra.mxu0 %v1340_v6  ;;  %277 = vmatprep.subr.bf16.mxu1 %v1366_v22  ;;  %v1418_v22 = vld [vmem:[#allocation2 + $0x120] sm:$0xff]  }
  0x34   :  { %1217 = vmatprep.subr.bf16.mxu0 %v1511_v0 }
  0x36   :  { %278 = vmatpush1.bf16.msra.mxu1 %v1368_v24 }
  0x37   :  { %1218 = vmatpush3.bf16.msra.mxu0 %v1341_v12  ;;  %279 = vmatprep.subr.bf16.mxu1 %v1369_v25  ;;  %v1404_v12 = vld [vmem:[#allocation2 + $0x90] sm:$0xff]  }
  0x38   :  { %1219 = vmatprep.subr.bf16.mxu0 %v1511_v0 }
  0x3a   :  { %280 = vmatpush1.bf16.msra.mxu1 %v1371_v34 }
  0x3b   :  { %1220 = vmatpush3.bf16.msra.mxu0 %v1342_v13  ;;  %281 = vmatprep.subr.bf16.mxu1 %v1372_v35  ;;  %v1405_v13 = vld [vmem:[#allocation2 + $0x88] sm:$0xff]   ;;  %v1100_v35 = vld [vmem:[%s1652_s3 + $0x11] ss:$8 sm:$0x3] }
  0x3c   :  { %1225 = vmatprep.subr.bf16.mxu0 %v1511_v0 }
  0x3e   :  { %1222 = vmatmul.mubr.bf16.vlgmr.msra.gmra.mxu0 %v48_v20  ;;  %282 = vmatpush1.bf16.msra.mxu1 %v1374_v36  ;;  %v183_v20 = vsub.s32 1, %v1593_v18 }
  0x3f   :  { %1226 = vmatpush3.bf16.msra.mxu0 %v1343_v19  ;;  %1241 = vmatprep.mubr.msk.bf16.mxu0 %vm1512_vm0, %v1511_v0  ;;  %v1417_v19 = vld [vmem:[#allocation2 + $0x128] sm:$0xff]  }
  0x40   :  { %1227 = vmatprep.subr.bf16.mxu0 %v1511_v0  ;;  %553 = vmatprep.subr.bf16.mxu1 %v1377_v37  ;;  %v184_v24 = vrot.slane %v1072_v21, %v183_v20  ;;  %v470_v36 = vrot.slane %v1100_v35, %v183_v20  ;;  %v1408_v20 = vld [vmem:[#allocation2 + $0xf0] sm:$0xff]  }
  0x43   :  { %1228 = vmatpush3.bf16.msra.mxu0 %v1344_v23 }
  0x44   :  { %1229 = vmatprep.subr.bf16.mxu0 %v1511_v0 }
  0x47   :  { %1230 = vmatpush3.bf16.msra.mxu0 %v1345_v26  ;;  %v1419_v26 = vld [vmem:[#allocation2 + $0x118] sm:$0xff]  }
  0x48   :  { %1231 = vmatprep.subr.bf16.mxu0 %v1511_v0 }
  0x4b   :  { %1232 = vmatpush3.bf16.msra.mxu0 %v1346_v27 }
  0x4c   :  { %1233 = vmatprep.subr.bf16.mxu0 %v1511_v0 }
  0x4f   :  { %1234 = vmatpush3.bf16.msra.mxu0 %v1347_v28 }
  0x50   :  { %1235 = vmatprep.subr.bf16.mxu0 %v1511_v0 }
  0x53   :  { %1236 = vmatpush3.bf16.msra.mxu0 %v1348_v29 }
  0x54   :  { %1237 = vmatprep.subr.bf16.mxu0 %v1511_v0 }
  0x57   :  { %1238 = vmatpush3.bf16.msra.mxu0 %v1349_v30  ;;  %v1420_v30 = vld [vmem:[#allocation2 + $0x110] sm:$0xff]  }
  0x58   :  { %1239 = vmatprep.subr.bf16.mxu0 %v1511_v0 }
  0x5b   :  { %1240 = vmatpush3.bf16.msra.mxu0 %v1350_v31 }
  0x5c   :  { %1245 = vmatprep.subr.bf16.mxu0 %v1511_v0 }
  0x5e   :  { %1242 = vmatmul.mubr.bf16.vlgmr.msra.gmra.mxu0 %v331_v33 }
  0x5f   :  { %1261 = vmatprep.mubr.msk.bf16.mxu0 %vm1512_vm0, %v1511_v0  ;;  %1246 = vmatpush3.bf16.msra.mxu0 %v1399_v7 }
  0x60   :  { %1247 = vmatprep.subr.bf16.mxu0 %v1511_v0 }
  0x63   :  { %1248 = vmatpush3.bf16.msra.mxu0 %v1400_v8 }
  0x64   :  { %1249 = vmatprep.subr.bf16.mxu0 %v1511_v0 }
  0x67   :  { %1250 = vmatpush3.bf16.msra.mxu0 %v1401_v9 }
  0x68   :  { %1251 = vmatprep.subr.bf16.mxu0 %v1511_v0 }
  0x6b   :  { %1252 = vmatpush3.bf16.msra.mxu0 %v1402_v10 }
  0x6c   :  { %1253 = vmatprep.subr.bf16.mxu0 %v1511_v0 }
  0x6f   :  { %1254 = vmatpush3.bf16.msra.mxu0 %v1403_v11  ;;  %v1090_v11 = vld [vmem:[%s1649_s0 + $0x18] sm:$0xff] }
  0x70   :  { %1255 = vmatprep.subr.bf16.mxu0 %v1511_v0 }
  0x73   :  { %1256 = vmatpush3.bf16.msra.mxu0 %v1404_v12 }
  0x74   :  { %1257 = vmatprep.subr.bf16.mxu0 %v1511_v0 }
  0x77   :  { %1258 = vmatpush3.bf16.msra.mxu0 %v1405_v13 }
  0x78   :  { %1259 = vmatprep.subr.bf16.mxu0 %v1511_v0 }
  0x7b   :  { %1260 = vmatpush3.bf16.msra.mxu0 %v1406_v14 }
  0x7c   :  { %1285 = vmatprep.subr.bf16.mxu0 %v1511_v0 }
  0xfe   :  { %v150_v40 = vpop.f32.mrf.mxu0 }
  0xff   :  { %v151_v41 = vadd.f32 %v150_v40, %v67_v39 }
 0x100   :  { %v1223_v42 = vpop.f32.mrf.mxu0 }
 0x101   :  { %v156_v43 = vmax.f32 %v151_v41, 0.0 }
 0x102   :  { %v153_v44 = vpop.f32.mrf.mxu0 }
 0x103   :  { %v157_v46 = vpack.c.bf16 %v156_v43, %v156_v43 }
 0x104   :  { %v1224_v48 = vpop.f32.mrf.mxu0 }
 0x105   :  { %300 = vmatmul.mubr.bf16.vlgmr.msra.gmra.mxu1 %v157_v46 }
 0x106   :  { %554 = vmatpush1.bf16.msra.mxu1 %v1375_v45  ;;  %585 = vmatprep.mubr.bf16.mxu1 %v1513_v38 }
 0x107   :  { %555 = vmatprep.subr.bf16.mxu1 %v1380_v47 }
 0x10a   :  { %556 = vmatpush1.bf16.msra.mxu1 %v1378_v49 }
 0x10b   :  { %557 = vmatprep.subr.bf16.mxu1 %v1383_v50 }
 0x10e   :  { %558 = vmatpush1.bf16.msra.mxu1 %v1381_v51 }
 0x10f   :  { %559 = vmatprep.subr.bf16.mxu1 %v1386_v52 }
 0x112   :  { %560 = vmatpush1.bf16.msra.mxu1 %v1384_v53 }
 0x113   :  { %561 = vmatprep.subr.bf16.mxu1 %v1389_v54 }
 0x116   :  { %562 = vmatpush1.bf16.msra.mxu1 %v1387_v55 }
 0x117   :  { %563 = vmatprep.subr.bf16.mxu1 %v1392_v56 }
 0x11a   :  { %564 = vmatpush1.bf16.msra.mxu1 %v1390_v57 }
 0x11b   :  { %565 = vmatprep.subr.bf16.mxu1 %v1395_v58  ;;  %v179_v58 = vsub.s32 0, %v1593_v18  ;;  %v1407_v18 = vld [vmem:[#allocation2 + $0xf8] sm:$0xff]  }
 0x11e   :  { %v435_v62 = vpop.f32.mrf.mxu0  ;;  %566 = vmatpush1.bf16.msra.mxu1 %v1393_v59 }
 0x11f   :  { %v436_v1 = vadd.f32 %v1091_v61, %v435_v62  ;;  %567 = vmatprep.subr.bf16.mxu1 %v1398_v60  ;;  %v1063_v60 = vld [vmem:[%s1649_s0 + $0x10] sm:$0xff]  ;;  %v180_v62 = vrot.slane %v1072_v21, %v179_v58  ;;  %v1409_v21 = vld [vmem:[#allocation2 + $0xe8] sm:$0xff]  }
 0x120   :  { %v1243_v2 = vpop.f32.mrf.mxu0 }
 0x121   :  { %v441_v3 = vmax.f32 %v436_v1, 0.0 }
 0x122   :  { %v438_v4 = vpop.f32.mrf.mxu0  ;;  %568 = vmatpush1.bf16.msra.mxu1 %v1396_v63 }
 0x123   :  { %v442_v5 = vpack.c.bf16 %v441_v3, %v441_v3  ;;  %1265 = vmatprep.subr.bf16.mxu1 %v1511_v0 }
 0x124   :  { %v1244_v6 = vpop.f32.mrf.mxu0 }
 0x125   :  { %586 = vmatmul.mubr.bf16.vlgmr.msra.gmra.mxu1 %v442_v5  ;;  %v466_v5 = vrot.slane %v1100_v35, %v179_v58 }
 0x126   :  { %1281 = vmatprep.mubr.msk.bf16.mxu1 %vm1512_vm0, %v1511_v0  ;;  %1266 = vmatpush3.bf16.msra.mxu1 %v1415_v16 }
 0x127   :  { %1267 = vmatprep.subr.bf16.mxu1 %v1511_v0 }
 0x12a   :  { %1268 = vmatpush3.bf16.msra.mxu1 %v1416_v17 }
 0x12b   :  { %1269 = vmatprep.subr.bf16.mxu1 %v1511_v0 }
 0x12e   :  { %1270 = vmatpush3.bf16.msra.mxu1 %v1417_v19 }
 0x12f   :  { %1271 = vmatprep.subr.bf16.mxu1 %v1511_v0 }
 0x132   :  { %1272 = vmatpush3.bf16.msra.mxu1 %v1418_v22  ;;  %v1410_v22 = vld [vmem:[#allocation2 + $0xe0] sm:$0xff]  }
 0x133   :  { %1273 = vmatprep.subr.bf16.mxu1 %v1511_v0 }
 0x136   :  { %1274 = vmatpush3.bf16.msra.mxu1 %v1419_v26  ;;  %v1414_v26 = vld [vmem:[#allocation2 + $0xc0] sm:$0xff]  }
 0x137   :  { %1275 = vmatprep.subr.bf16.mxu1 %v1511_v0 }
 0x13a   :  { %1276 = vmatpush3.bf16.msra.mxu1 %v1420_v30 }
 0x13b   :  { %1277 = vmatprep.subr.bf16.mxu1 %v1511_v0 }
 0x13e   :  { %1278 = vmatpush3.bf16.msra.mxu1 %v1421_v32 }
 0x13f   :  { %1279 = vmatprep.subr.bf16.mxu1 %v1511_v0 }
 0x1c5   :  { %v301_v23 = vpop.f32.mrf.mxu1 }
 0x1c6   :  { %v302_v4 = vadd.f32 %v301_v23, %v180_v62  ;;  %v1411_v23 = vld [vmem:[#allocation2 + $0xd8] sm:$0xff]  }
 0x1c7   :  { %v303_v25 = vpop.f32.mrf.mxu1 }
 0x1c8   :  { %v304_v28 = vadd.f32 %v303_v25, %v184_v24  ;;  %v1412_v24 = vld [vmem:[#allocation2 + $0xd0] sm:$0xff]   ;;  %v1413_v25 = vld [vmem:[#allocation2 + $0xc8] sm:$0xff]  }
 0x1c9   :  { %v305_v27 = vpop.f32.mrf.mxu1 }
 0x1ca   :  { %v311_v31 = vand.u32 2147483647, %v304_v28  ;;  %v308_v56 = vmax.f32 %v304_v28, 0.0  ;;  %vm309_vm2 = vcmp.ne.f32.partialorder %v304_v28, %v304_v28  ;;  %v1422_v27 = vld [vmem:[#allocation2 + $0x100] sm:$0xff]  }
 0x1cb   :  { %v306_v29 = vpop.f32.mrf.mxu1  ;;  %1280 = vmatpush3.bf16.msra.mxu1 %v1422_v27 }
 0x1cc   :  { %v312_v33 = vsub.f32 0.0, %v311_v31  ;;  %1305 = vmatprep.subr.bf16.mxu1 %v1511_v0 }
 0x1ce   :  { %v313_v34 = vmul.f32 1.442695, %v312_v33 }
 0x1d0   :  { %1431 = vpow2.f32 %v313_v34  ;;  %v1423_v34 = vld [vmem:[#allocation2 + $0x178] sm:$0xff]  }
 0x1dd   :  { %v1432_v38 = vpop.eup %1431 }
 0x1de   :  { %v315_v42 = vadd.f32 1.0, %v1432_v38  ;;  %v318_v47 = vmul.f32 -0.5, %v1432_v38  ;;  %v321_v51 = vand.u32 2147483647, %v1432_v38 }
 0x1e0   :  { %1433 = vlog2.f32 %v315_v42  ;;  %v319_v49 = vadd.f32 1.0, %v318_v47  ;;  %vm322_vm1 = vcmp.lt.f32.partialorder %v321_v51, 0.0004427343  ;;  %v1429_v42 = vld [vmem:[#allocation2 + $0x148] sm:$0xff]  }
 0x1e2   :  { %v320_v54 = vmul.f32 %v1432_v38, %v319_v49  ;;  %v1425_v38 = vld [vmem:[#allocation2 + $0x168] sm:$0xff]  }
 0x1e5   :  { %v587_v37 = vpop.f32.mrf.mxu1 }
 0x1e6   :  { %v588_v13 = vadd.f32 %v587_v37, %v466_v5  ;;  %v1424_v37 = vld [vmem:[#allocation2 + $0x170] sm:$0xff]  }
 0x1e7   :  { %v589_v39 = vpop.f32.mrf.mxu1 }
 0x1e8   :  { %v590_v40 = vadd.f32 %v589_v39, %v470_v36  ;;  %v1426_v39 = vld [vmem:[#allocation2 + $0x160] sm:$0xff]  }
 0x1e9   :  { %v591_v41 = vpop.f32.mrf.mxu1 }
 0x1ea   :  { %v597_v43 = vand.u32 2147483647, %v590_v40  ;;  %v594_v8 = vmax.f32 %v590_v40, 0.0  ;;  %vm595_vm4 = vcmp.ne.f32.partialorder %v590_v40, %v590_v40  ;;  %v1428_v41 = vld [vmem:[#allocation2 + $0x150] sm:$0xff]  }
 0x1eb   :  { %v592_v44 = vpop.f32.mrf.mxu1 }
 0x1ec   :  { %v598_v45 = vsub.f32 0.0, %v597_v43  ;;  %v1133_v43 = vld [vmem:[%s1652_s3 + $0x12] ss:$0 sm:$0xff] }
 0x1ed   :  { %v1434_v48 = vpop.eup %1433 }
 0x1ee   :  { %v599_v46 = vmul.f32 1.442695, %v598_v45  ;;  %v317_v52 = vmul.f32 0.6931472, %v1434_v48  ;;  %v1430_v45 = vld [vmem:[#allocation2 + $0x140] sm:$0xff]  }
 0x1f0   :  { %1435 = vpow2.f32 %v599_v46  ;;  %v323_v55 = vsel %vm322_vm1, %v320_v54, %v317_v52  ;;  %v741_v52 = vld [vmem:[%s1652_s3 + $0x3] ss:$0 sm:$0xff] }
 0x1f1   :  { %v324_v57 = vadd.f32 %v323_v55, %v308_v56 }
 0x1f3   :  { %v325_v61 = vsel %vm309_vm2, %v304_v28, %v324_v57  ;;  %v633_v28 = vld [vmem:[%s1652_s3 + $0x2] ss:$0 sm:$0xff] }
 0x1f4   :  { %v327_v2 = vmul.f32 %v1063_v60, %v325_v61 }
 0x1f6   :  { %v328_v9 = vadd.f32 %v327_v2, %v302_v4 }
 0x1f8   :  { %v612_v15 = vadd.f32 %v588_v13, %v328_v9 }
 0x1fd   :  { %v1436_v50 = vpop.eup %1435 }
 0x1fe   :  { %v601_v53 = vadd.f32 1.0, %v1436_v50  ;;  %v604_v59 = vmul.f32 -0.5, %v1436_v50  ;;  %v607_v1 = vand.u32 2147483647, %v1436_v50 }
 0x200   :  { %1437 = vlog2.f32 %v601_v53  ;;  %v605_v63 = vadd.f32 1.0, %v604_v59  ;;  %vm608_vm3 = vcmp.lt.f32.partialorder %v607_v1, 0.0004427343 }
 0x202   :  { %v606_v7 = vmul.f32 %v1436_v50, %v605_v63 }
 0x20d   :  { %v1438_v3 = vpop.eup %1437 }
 0x20e   :  { %v603_v6 = vmul.f32 0.6931472, %v1438_v3 }
 0x210   :  { %v609_v10 = vsel %vm608_vm3, %v606_v7, %v603_v6 }
 0x211   :  { %v610_v12 = vadd.f32 %v609_v10, %v594_v8 }
 0x213   :  { %v611_v14 = vsel %vm595_vm4, %v590_v40, %v610_v12  ;;  %v1427_v40 = vld [vmem:[#allocation2 + $0x158] sm:$0xff]  }
 0x214   :  { %v613_v16 = vmul.f32 %v1090_v11, %v611_v14 }
 0x216   :  { %v614_v17 = vadd.f32 %v613_v16, %v612_v15 }
 0x218   :  { %v615_v19 = vpack.c.bf16 %v614_v17, %v614_v17 }
 0x21a   :  { %1262 = vmatmul.mubr.bf16.vlgmr.msra.gmra.mxu0 %v615_v19 }
 0x21b   :  { %1286 = vmatpush3.bf16.msra.mxu0 %v1407_v18  ;;  %1301 = vmatprep.mubr.msk.bf16.mxu0 %vm1512_vm0, %v1511_v0 }
 0x21c   :  { %1287 = vmatprep.subr.bf16.mxu0 %v1511_v0 }
 0x21f   :  { %1288 = vmatpush3.bf16.msra.mxu0 %v1408_v20 }
 0x220   :  { %1289 = vmatprep.subr.bf16.mxu0 %v1511_v0 }
 0x223   :  { %1290 = vmatpush3.bf16.msra.mxu0 %v1409_v21 }
 0x224   :  { %1291 = vmatprep.subr.bf16.mxu0 %v1511_v0 }
 0x227   :  { %1292 = vmatpush3.bf16.msra.mxu0 %v1410_v22 }
 0x228   :  { %1293 = vmatprep.subr.bf16.mxu0 %v1511_v0 }
 0x22b   :  { %1294 = vmatpush3.bf16.msra.mxu0 %v1411_v23 }
 0x22c   :  { %1295 = vmatprep.subr.bf16.mxu0 %v1511_v0 }
 0x22f   :  { %1296 = vmatpush3.bf16.msra.mxu0 %v1412_v24 }
 0x230   :  { %1297 = vmatprep.subr.bf16.mxu0 %v1511_v0 }
 0x233   :  { %1298 = vmatpush3.bf16.msra.mxu0 %v1413_v25 }
 0x234   :  { %1299 = vmatprep.subr.bf16.mxu0 %v1511_v0 }
 0x237   :  { %1300 = vmatpush3.bf16.msra.mxu0 %v1414_v26 }
 0x23a   :  { %1302 = vmatmul.mubr.bf16.vlgmr.msra.gmra.mxu0 %v615_v19 }
 0x2da   :  { %v716_v29 = vpop.f32.mrf.mxu0 }
 0x2db   :  { %v717_v30 = vadd.f32 %v716_v29, %v633_v28 }
 0x2dc   :  { %v1263_v31 = vpop.f32.mrf.mxu0 }
 0x2dd   :  { %v722_v32 = vmax.f32 %v717_v30, 0.0 }
 0x2de   :  { %v719_v33 = vpop.f32.mrf.mxu0 }
 0x2df   :  { %v723_v35 = vpack.c.bf16 %v722_v32, %v722_v32 }
 0x2e0   :  { %v1264_v36 = vpop.f32.mrf.mxu0 }
 0x2e1   :  { %1282 = vmatmul.mubr.bf16.vlgmr.msra.gmra.mxu1 %v723_v35 }
 0x2e2   :  { %1306 = vmatpush3.bf16.msra.mxu1 %v1423_v34  ;;  %1321 = vmatprep.mubr.msk.bf16.mxu1 %vm1512_vm0, %v1511_v0 }
 0x2e3   :  { %1307 = vmatprep.subr.bf16.mxu1 %v1511_v0 }
 0x2e6   :  { %1308 = vmatpush3.bf16.msra.mxu1 %v1424_v37 }
 0x2e7   :  { %1309 = vmatprep.subr.bf16.mxu1 %v1511_v0 }
 0x2ea   :  { %1310 = vmatpush3.bf16.msra.mxu1 %v1425_v38 }
 0x2eb   :  { %1311 = vmatprep.subr.bf16.mxu1 %v1511_v0 }
 0x2ee   :  { %1312 = vmatpush3.bf16.msra.mxu1 %v1426_v39 }
 0x2ef   :  { %1313 = vmatprep.subr.bf16.mxu1 %v1511_v0 }
 0x2f2   :  { %1314 = vmatpush3.bf16.msra.mxu1 %v1427_v40 }
 0x2f3   :  { %1315 = vmatprep.subr.bf16.mxu1 %v1511_v0 }
 0x2f6   :  { %1316 = vmatpush3.bf16.msra.mxu1 %v1428_v41 }
 0x2f7   :  { %1317 = vmatprep.subr.bf16.mxu1 %v1511_v0 }
 0x2fa   :  { %v931_v44 = vpop.f32.mrf.mxu0  ;;  %1318 = vmatpush3.bf16.msra.mxu1 %v1429_v42 }
 0x2fb   :  { %v932_v46 = vadd.f32 %v1133_v43, %v931_v44  ;;  %1319 = vmatprep.subr.bf16.mxu1 %v1511_v0  ;;  %v1142_v0 = vld [vmem:[%s1652_s3 + $0x13] ss:$0 sm:$0xff] }
 0x2fc   :  { %v1303_v47 = vpop.f32.mrf.mxu0 }
 0x2fd   :  { %v937_v48 = vmax.f32 %v932_v46, 0.0 }
 0x2fe   :  { %v934_v49 = vpop.f32.mrf.mxu0  ;;  %1320 = vmatpush3.bf16.msra.mxu1 %v1430_v45 }
 0x2ff   :  { %v938_v50 = vpack.c.bf16 %v937_v48, %v937_v48 }
 0x300   :  { %v1304_v51 = vpop.f32.mrf.mxu0 }
 0x301   :  { %1322 = vmatmul.mubr.bf16.vlgmr.msra.gmra.mxu1 %v938_v50 }
 0x3a1   :  { %v824_v53 = vpop.f32.mrf.mxu1 }
 0x3a2   :  { %v825_v54 = vadd.f32 %v824_v53, %v741_v52 }
 0x3a3   :  { %v1283_v55 = vpop.f32.mrf.mxu1 }
 0x3a4   :  { %830 = vst [vmem:[#allocation7] sm:$0xff] %v825_v54 }
 0x3a5   :  { %v827_v56 = vpop.f32.mrf.mxu1 }
 0x3a7   :  { %v1284_v57 = vpop.f32.mrf.mxu1 }
 0x3c1   :  { %v1039_v58 = vpop.f32.mrf.mxu1 }
 0x3c2   :  { %v1040_v59 = vadd.f32 %v1142_v0, %v1039_v58 }
 0x3c3   :  { %v1323_v60 = vpop.f32.mrf.mxu1 }
 0x3c4   :  { %1045 = vst [vmem:[#allocation7 + $0x8] sm:$0xff] %v1040_v59 }
 0x3c5   :  { %v1042_v61 = vpop.f32.mrf.mxu1 }
 0x3c6   :  { %1490 = shalt.err (!%p1487_p0)
}
 0x3c7   :  { %1055 = dma.vmem_to_hbm [thread:$0]  %s1053_s25, 256, %s1653_s4, [#allocation4]   ;;  %v1324_v62 = vpop.f32.mrf.mxu1 }
 0x3c8   :  { %1503 = dma.done.wait [#allocation4], 256  }
 0x3c9   :  { %1504 = vsyncadd [#allocation4], 4294967040 }
 0x3ca   :  { %1059 = vsyncpa [#allocation3], 1 }
 0x3cb   :  { %1060 = vsyncpa [#allocation6], 1 }
 0x3cc   :  { %1061 = vsyncpa [#allocation4], 1 }

</bundles_post_ra>
